<compile_context>
chip_gen: v7x
topology: tpu7x:2x2x1
jax: 0.10.0
libtpu: 0.0.40
codegen_flags: <defaults>
</compile_context>

<pallas_src>
import jax
import jax.numpy as jnp
from jax.experimental import pallas as pl
from jax.experimental.pallas import tpu as pltpu

EPS = 1e-5


def double_conv_kernel(x_ref, bw1_ref, b1_ref, g1_ref, be1_ref,
                       bw2_ref, b2_ref, g2_ref, be2_ref,
                       fold_ref, spread_ref,
                       o_ref, xp_scr, yp_scr):
    # x_ref:     (N, H, W*Cin)        bf16  NHWC input with (W, C) packed on lanes
    # bw1_ref:   (3, W*Cin,  W*Cout)  bf16  banded conv1 weights (one per kh)
    # bw2_ref:   (3, W*Cout, W*Cout)  bf16  banded conv2 weights
    # b/g/be:    (1, Cout)            f32   conv bias / BN weight / BN bias
    # fold_ref:  (W*Cout, Cout)       f32   packed-lane -> per-channel reduction
    # spread_ref:(Cout, W*Cout)       f32   per-channel -> packed-lane broadcast
    # o_ref:     (N*H, W*Cout)        f32   lane-dense output slab
    # xp_scr:    (N, H+2, W*Cin)      bf16  conv1 input w/ 1-row top/bottom halo
    # yp_scr:    (N, H+2, W*Cout)     bf16  conv2 input w/ 1-row top/bottom halo
    N, Hp, WCin = xp_scr.shape
    H = Hp - 2
    M, WCout = o_ref.shape                       # M = N*H
    Cout = fold_ref.shape[-1]
    inv_cnt = 1.0 / float(M * (WCout // Cout))   # 1 / (N*H*W)

    def conv3x3_rows(scr_ref, bw_ref):
        # 3 lane-dense MXU matmuls; the kw taps and the 1-px W halo are folded
        # into the banded weight matrix.  Accumulator starts from the first tap
        # (no zero-init pass); f32 accumulation of bf16 operands.
        acc = None
        for kh in range(3):
            lhs = scr_ref[:, kh:kh + H, :].reshape(M, scr_ref.shape[-1])
            d = jnp.dot(lhs, bw_ref[kh], preferred_element_type=jnp.float32)
            acc = d if acc is None else acc + d
        return acc                               # (M, W*Cout) f32

    def bias_bn_relu(acc, b_ref, g_ref, be_ref):
        # Bias + training-mode BatchNorm (one-pass biased batch stats) + ReLU,
        # entirely in the packed (N*H, W*Cout) layout at full lane occupancy.
        yp = acc + jnp.dot(b_ref[...], spread_ref[...],
                           preferred_element_type=jnp.float32)
        s = jnp.dot(jnp.sum(yp, axis=0, keepdims=True), fold_ref[...],
                    preferred_element_type=jnp.float32)            # (1, Cout)
        ss = jnp.dot(jnp.sum(yp * yp, axis=0, keepdims=True), fold_ref[...],
                     preferred_element_type=jnp.float32)           # (1, Cout)
        mean = s * inv_cnt
        var = ss * inv_cnt - mean * mean                           # E[y^2]-E[y]^2
        scale = g_ref[...] * jax.lax.rsqrt(var + EPS)
        shift = be_ref[...] - mean * scale
        scale_l = jnp.dot(scale, spread_ref[...],
                          preferred_element_type=jnp.float32)      # (1, W*Cout)
        shift_l = jnp.dot(shift, spread_ref[...],
                          preferred_element_type=jnp.float32)
        return jnp.maximum(yp * scale_l + shift_l, 0.0)            # (M, W*Cout) f32

    # ---- conv1 input: zero ONLY the two halo rows, write the interior once ----
    xp_scr[:, 0:1, :] = jnp.zeros((N, 1, WCin), xp_scr.dtype)
    xp_scr[:, Hp - 1:Hp, :] = jnp.zeros((N, 1, WCin), xp_scr.dtype)
    xp_scr[:, 1:H + 1, :] = x_ref[...]

    y1 = bias_bn_relu(conv3x3_rows(xp_scr, bw1_ref), b1_ref, g1_ref, be1_ref)

    # ---- conv2 input (bf16 for the MXU), again halo rows only ----
    yp_scr[:, 0:1, :] = jnp.zeros((N, 1, WCout), yp_scr.dtype)
    yp_scr[:, Hp - 1:Hp, :] = jnp.zeros((N, 1, WCout), yp_scr.dtype)
    yp_scr[:, 1:H + 1, :] = y1.reshape(N, H, WCout).astype(yp_scr.dtype)

    z = bias_bn_relu(conv3x3_rows(yp_scr, bw2_ref), b2_ref, g2_ref, be2_ref)

    # ---- lane-dense (N*H, W*Cout) store: full-vreg unmasked vst ----
    o_ref[...] = z


def _band_matrices(w, W):
    """Fold the kw taps (and the 1-px W halo) of a 3x3 conv into 3 banded
    matmul weights: returns (3, W*Cin, W*Cout).

    band[kh][wi*Cin + ci, wo*Cout + co] = w[kh, wi - wo + 1, ci, co]
    when 0 <= wi - wo + 1 < 3, else 0 (out-of-range taps == zero padding)."""
    KH, KW, Cin, Cout = w.shape
    wi = jnp.arange(W)[:, None]                  # input column
    wo = jnp.arange(W)[None, :]                  # output column
    kw = wi - wo + 1                             # which kw tap connects wi -> wo
    valid = ((kw >= 0) & (kw < KW)).astype(w.dtype)
    kw_c = jnp.clip(kw, 0, KW - 1)
    bands = []
    for kh in range(KH):
        taps = w[kh][kw_c] * valid[:, :, None, None]          # (W, W, Cin, Cout)
        bands.append(jnp.transpose(taps, (0, 2, 1, 3)).reshape(W * Cin, W * Cout))
    return jnp.stack(bands, 0)


def double_conv(x_nchw, params):
    """Forward pass of double_conv. x_nchw: (N, Cin, H, W) -> (N, Cout, H, W)."""
    N, Cin, H, W = x_nchw.shape
    Cout = params["w1"].shape[-1]
    M = N * H

    # NHWC with (W, C) packed on the lane axis; bf16 operands for the MXU.
    x = jnp.transpose(x_nchw, (0, 2, 3, 1)).reshape(N, H, W * Cin).astype(jnp.bfloat16)

    # Banded weights + channel fold/spread helpers (tiny; in a real model these
    # would be precomputed once per weight update).
    bw1 = _band_matrices(params["w1"], W).astype(jnp.bfloat16)   # (3, W*Cin,  W*Cout)
    bw2 = _band_matrices(params["w2"], W).astype(jnp.bfloat16)   # (3, W*Cout, W*Cout)
    eye = jnp.eye(Cout, dtype=jnp.float32)
    fold = jnp.tile(eye, (W, 1))                                 # (W*Cout, Cout)
    spread = jnp.tile(eye, (1, W))                               # (Cout, W*Cout)

    flops = 2 * M * 3 * ((W * Cin) * (W * Cout) + (W * Cout) * (W * Cout))
    bytes_accessed = (x.size * 2 + bw1.size * 2 + bw2.size * 2
                      + M * W * Cout * 4 + (fold.size + spread.size + 8 * Cout) * 4)

    out = pl.pallas_call(
        double_conv_kernel,
        out_shape=jax.ShapeDtypeStruct((M, W * Cout), jnp.float32),
        in_specs=[pl.BlockSpec(memory_space=pltpu.MemorySpace.VMEM)] * 11,
        out_specs=pl.BlockSpec(memory_space=pltpu.MemorySpace.VMEM),
        scratch_shapes=[pltpu.VMEM((N, H + 2, W * Cin), jnp.bfloat16),
                        pltpu.VMEM((N, H + 2, W * Cout), jnp.bfloat16)],
        cost_estimate=pl.CostEstimate(flops=int(flops),
                                      transcendentals=int(2 * Cout),
                                      bytes_accessed=int(bytes_accessed)),
    )(x,
      bw1, params["b1"], params["g1"], params["be1"],
      bw2, params["b2"], params["g2"], params["be2"],
      fold, spread)

    out = out.reshape(N, H, W, Cout)                 # packed slab -> NHWC
    return jnp.transpose(out, (0, 3, 1, 2))          # -> NCHW


def _ref_double_conv(x_nchw, params):
    """Plain-JAX reference (PyTorch training-mode forward; conv operands in
    bf16 to mirror the kernel's MXU precision, accumulation/BN in f32)."""
    def conv(x, w, b):
        xb = x.astype(jnp.bfloat16)
        w_oihw = jnp.transpose(w, (3, 2, 0, 1)).astype(jnp.bfloat16)
        y = jax.lax.conv_general_dilated(
            xb, w_oihw, window_strides=(1, 1), padding="SAME",
            dimension_numbers=("NCHW", "OIHW", "NCHW"),
            preferred_element_type=jnp.float32)
        return y + b.reshape(1, -1, 1, 1)

    def bn_relu(y, g, be):
        mean = jnp.mean(y, axis=(0, 2, 3), keepdims=True)
        var = jnp.mean((y - mean) ** 2, axis=(0, 2, 3), keepdims=True)
        y = (y - mean) * jax.lax.rsqrt(var + EPS)
        y = y * g.reshape(1, -1, 1, 1) + be.reshape(1, -1, 1, 1)
        return jnp.maximum(y, 0.0)

    y = bn_relu(conv(x_nchw, params["w1"], params["b1"][0]),
                params["g1"][0], params["be1"][0])
    z = bn_relu(conv(y, params["w2"], params["b2"][0]),
                params["g2"][0], params["be2"][0])
    return z


def init_params(key, in_ch, out_ch):
    k1, k2, k3, k4 = jax.random.split(key, 4)
    return {
        "w1": 0.1 * jax.random.normal(k1, (3, 3, in_ch, out_ch), jnp.float32),
        "b1": 0.1 * jax.random.normal(k2, (1, out_ch), jnp.float32),
        "g1": jnp.ones((1, out_ch), jnp.float32),     # BatchNorm weight default
        "be1": jnp.zeros((1, out_ch), jnp.float32),   # BatchNorm bias default
        "w2": 0.1 * jax.random.normal(k3, (3, 3, out_ch, out_ch), jnp.float32),
        "b2": 0.1 * jax.random.normal(k4, (1, out_ch), jnp.float32),
        "g2": jnp.ones((1, out_ch), jnp.float32),
        "be2": jnp.zeros((1, out_ch), jnp.float32),
    }


if __name__ == "__main__":
    key = jax.random.PRNGKey(0)
    kx, kp = jax.random.split(key)

    N, IN_CH, OUT_CH, H, W = 2, 4, 8, 16, 16
    x = jax.random.normal(kx, (N, IN_CH, H, W), jnp.float32)
    params = init_params(kp, IN_CH, OUT_CH)

    out = jax.block_until_ready(double_conv(x, params))
    ref = _ref_double_conv(x, params)

    assert out.shape == (N, OUT_CH, H, W)
    max_err = float(jnp.max(jnp.abs(out - ref)))
    assert jnp.allclose(out, ref, atol=2e-3, rtol=2e-3), (
        f"mismatch vs reference, max abs err {max_err}")

    print("KERNEL_OK")
</pallas_src>

<mosaic_0001>
module attributes {stable_mosaic.version = 11 : i64} {
  func.func @double_conv_kernel(%arg0: memref<2x16x64xbf16, #tpu.memory_space<vmem>>, %arg1: memref<3x64x128xbf16, #tpu.memory_space<vmem>>, %arg2: memref<1x8xf32, #tpu.memory_space<vmem>>, %arg3: memref<1x8xf32, #tpu.memory_space<vmem>>, %arg4: memref<1x8xf32, #tpu.memory_space<vmem>>, %arg5: memref<3x128x128xbf16, #tpu.memory_space<vmem>>, %arg6: memref<1x8xf32, #tpu.memory_space<vmem>>, %arg7: memref<1x8xf32, #tpu.memory_space<vmem>>, %arg8: memref<1x8xf32, #tpu.memory_space<vmem>>, %arg9: memref<128x8xf32, #tpu.memory_space<vmem>>, %arg10: memref<8x128xf32, #tpu.memory_space<vmem>>, %arg11: memref<32x128xf32, #tpu.memory_space<vmem>>, %arg12: memref<2x18x64xbf16, #tpu.memory_space<vmem>>, %arg13: memref<2x18x128xbf16, #tpu.memory_space<vmem>>) attributes {dimension_semantics = [], scalar_prefetch = 0 : i64, scratch_operands = 2 : i64, tpu.core_type = #tpu.core_type<tc>} {
    %cst = arith.constant 0.000000e+00 : bf16
    %0 = vector.broadcast %cst : bf16 to vector<2x1x64xbf16>
    %c0 = arith.constant 0 : index
    %c0_0 = arith.constant 0 : index
    %c0_1 = arith.constant 0 : index
    %1 = vector.load %arg12[%c0, %c0_0, %c0_1] : memref<2x18x64xbf16, #tpu.memory_space<vmem>>, vector<2x1x64xbf16>
    tpu.vector_store %arg12[%c0, %c0_0, %c0_1], %0 {strides = array<i32>} : memref<2x18x64xbf16, #tpu.memory_space<vmem>>, vector<2x1x64xbf16>,
    %cst_2 = arith.constant 0.000000e+00 : bf16
    %2 = vector.broadcast %cst_2 : bf16 to vector<2x1x64xbf16>
    %c0_3 = arith.constant 0 : index
    %c17 = arith.constant 17 : index
    %c0_4 = arith.constant 0 : index
    %3 = vector.load %arg12[%c0_3, %c17, %c0_4] : memref<2x18x64xbf16, #tpu.memory_space<vmem>>, vector<2x1x64xbf16>
    tpu.vector_store %arg12[%c0_3, %c17, %c0_4], %2 {strides = array<i32>} : memref<2x18x64xbf16, #tpu.memory_space<vmem>>, vector<2x1x64xbf16>,
    %c0_5 = arith.constant 0 : index
    %c0_6 = arith.constant 0 : index
    %c0_7 = arith.constant 0 : index
    %4 = vector.load %arg0[%c0_5, %c0_6, %c0_7] : memref<2x16x64xbf16, #tpu.memory_space<vmem>>, vector<2x16x64xbf16>
    %c0_8 = arith.constant 0 : index
    %c1 = arith.constant 1 : index
    %c0_9 = arith.constant 0 : index
    %5 = vector.load %arg12[%c0_8, %c1, %c0_9] : memref<2x18x64xbf16, #tpu.memory_space<vmem>>, vector<2x16x64xbf16>
    tpu.vector_store %arg12[%c0_8, %c1, %c0_9], %4 {strides = array<i32>} : memref<2x18x64xbf16, #tpu.memory_space<vmem>>, vector<2x16x64xbf16>,
    %c0_10 = arith.constant 0 : index
    %c0_11 = arith.constant 0 : index
    %c0_12 = arith.constant 0 : index
    %6 = vector.load %arg12[%c0_10, %c0_11, %c0_12] : memref<2x18x64xbf16, #tpu.memory_space<vmem>>, vector<2x16x64xbf16>
    %7 = vector.shape_cast %6 : vector<2x16x64xbf16> to vector<32x64xbf16>
    %c0_13 = arith.constant 0 : index
    %c0_14 = arith.constant 0 : index
    %c0_15 = arith.constant 0 : index
    %8 = vector.load %arg1[%c0_13, %c0_14, %c0_15] : memref<3x64x128xbf16, #tpu.memory_space<vmem>>, vector<1x64x128xbf16>
    %9 = vector.shape_cast %8 : vector<1x64x128xbf16> to vector<64x128xbf16>
    %cst_16 = arith.constant dense<0.000000e+00> : vector<32x128xf32>
    %10 = tpu.matmul %7, %9, %cst_16 {dimension_numbers = #tpu.dot_dimension_numbers<[1], [0], [0], [1], [0, 0, 1, 1], [], []>} : vector<32x64xbf16>, vector<64x128xbf16>, vector<32x128xf32> -> vector<32x128xf32>
    %c0_17 = arith.constant 0 : index
    %c1_18 = arith.constant 1 : index
    %c0_19 = arith.constant 0 : index
    %11 = vector.load %arg12[%c0_17, %c1_18, %c0_19] : memref<2x18x64xbf16, #tpu.memory_space<vmem>>, vector<2x16x64xbf16>
    %12 = vector.shape_cast %11 : vector<2x16x64xbf16> to vector<32x64xbf16>
    %c1_20 = arith.constant 1 : index
    %c0_21 = arith.constant 0 : index
    %c0_22 = arith.constant 0 : index
    %13 = vector.load %arg1[%c1_20, %c0_21, %c0_22] : memref<3x64x128xbf16, #tpu.memory_space<vmem>>, vector<1x64x128xbf16>
    %14 = vector.shape_cast %13 : vector<1x64x128xbf16> to vector<64x128xbf16>
    %cst_23 = arith.constant dense<0.000000e+00> : vector<32x128xf32>
    %15 = tpu.matmul %12, %14, %cst_23 {dimension_numbers = #tpu.dot_dimension_numbers<[1], [0], [0], [1], [0, 0, 1, 1], [], []>} : vector<32x64xbf16>, vector<64x128xbf16>, vector<32x128xf32> -> vector<32x128xf32>
    %16 = arith.addf %10, %15 : vector<32x128xf32>
    %c0_24 = arith.constant 0 : index
    %c2 = arith.constant 2 : index
    %c0_25 = arith.constant 0 : index
    %17 = vector.load %arg12[%c0_24, %c2, %c0_25] : memref<2x18x64xbf16, #tpu.memory_space<vmem>>, vector<2x16x64xbf16>
    %18 = vector.shape_cast %17 : vector<2x16x64xbf16> to vector<32x64xbf16>
    %c2_26 = arith.constant 2 : index
    %c0_27 = arith.constant 0 : index
    %c0_28 = arith.constant 0 : index
    %19 = vector.load %arg1[%c2_26, %c0_27, %c0_28] : memref<3x64x128xbf16, #tpu.memory_space<vmem>>, vector<1x64x128xbf16>
    %20 = vector.shape_cast %19 : vector<1x64x128xbf16> to vector<64x128xbf16>
    %cst_29 = arith.constant dense<0.000000e+00> : vector<32x128xf32>
    %21 = tpu.matmul %18, %20, %cst_29 {dimension_numbers = #tpu.dot_dimension_numbers<[1], [0], [0], [1], [0, 0, 1, 1], [], []>} : vector<32x64xbf16>, vector<64x128xbf16>, vector<32x128xf32> -> vector<32x128xf32>
    %22 = arith.addf %16, %21 : vector<32x128xf32>
    %c0_30 = arith.constant 0 : index
    %c0_31 = arith.constant 0 : index
    %23 = vector.load %arg2[%c0_30, %c0_31] : memref<1x8xf32, #tpu.memory_space<vmem>>, vector<1x8xf32>
    %c0_32 = arith.constant 0 : index
    %c0_33 = arith.constant 0 : index
    %24 = vector.load %arg10[%c0_32, %c0_33] : memref<8x128xf32, #tpu.memory_space<vmem>>, vector<8x128xf32>
    %cst_34 = arith.constant dense<0.000000e+00> : vector<1x128xf32>
    %25 = tpu.matmul %23, %24, %cst_34 {dimension_numbers = #tpu.dot_dimension_numbers<[1], [0], [0], [1], [0, 0, 1, 1], [], []>} : vector<1x8xf32>, vector<8x128xf32>, vector<1x128xf32> -> vector<1x128xf32>
    %26 = vector.broadcast %25 : vector<1x128xf32> to vector<32x128xf32>
    %27 = arith.addf %22, %26 : vector<32x128xf32>
    %cst_35 = arith.constant dense<0.000000e+00> : vector<128xf32>
    %28 = vector.multi_reduction <add>, %27, %cst_35 [0] : vector<32x128xf32> to vector<128xf32>
    %29 = vector.shape_cast %28 : vector<128xf32> to vector<1x128xf32>
    %c0_36 = arith.constant 0 : index
    %c0_37 = arith.constant 0 : index
    %30 = vector.load %arg9[%c0_36, %c0_37] : memref<128x8xf32, #tpu.memory_space<vmem>>, vector<128x8xf32>
    %cst_38 = arith.constant dense<0.000000e+00> : vector<1x8xf32>
    %31 = tpu.matmul %29, %30, %cst_38 {dimension_numbers = #tpu.dot_dimension_numbers<[1], [0], [0], [1], [0, 0, 1, 1], [], []>} : vector<1x128xf32>, vector<128x8xf32>, vector<1x8xf32> -> vector<1x8xf32>
    %32 = arith.mulf %27, %27 : vector<32x128xf32>
    %cst_39 = arith.constant dense<0.000000e+00> : vector<128xf32>
    %33 = vector.multi_reduction <add>, %32, %cst_39 [0] : vector<32x128xf32> to vector<128xf32>
    %34 = vector.shape_cast %33 : vector<128xf32> to vector<1x128xf32>
    %c0_40 = arith.constant 0 : index
    %c0_41 = arith.constant 0 : index
    %35 = vector.load %arg9[%c0_40, %c0_41] : memref<128x8xf32, #tpu.memory_space<vmem>>, vector<128x8xf32>
    %cst_42 = arith.constant dense<0.000000e+00> : vector<1x8xf32>
    %36 = tpu.matmul %34, %35, %cst_42 {dimension_numbers = #tpu.dot_dimension_numbers<[1], [0], [0], [1], [0, 0, 1, 1], [], []>} : vector<1x128xf32>, vector<128x8xf32>, vector<1x8xf32> -> vector<1x8xf32>
    %cst_43 = arith.constant 0.001953125 : f32
    %37 = vector.broadcast %cst_43 : f32 to vector<1x8xf32>
    %38 = arith.mulf %31, %37 : vector<1x8xf32>
    %cst_44 = arith.constant 0.001953125 : f32
    %39 = vector.broadcast %cst_44 : f32 to vector<1x8xf32>
    %40 = arith.mulf %36, %39 : vector<1x8xf32>
    %41 = arith.mulf %38, %38 : vector<1x8xf32>
    %42 = arith.subf %40, %41 : vector<1x8xf32>
    %c0_45 = arith.constant 0 : index
    %c0_46 = arith.constant 0 : index
    %43 = vector.load %arg3[%c0_45, %c0_46] : memref<1x8xf32, #tpu.memory_space<vmem>>, vector<1x8xf32>
    %cst_47 = arith.constant 9.99999974E-6 : f32
    %44 = vector.broadcast %cst_47 : f32 to vector<1x8xf32>
    %45 = arith.addf %42, %44 : vector<1x8xf32>
    %46 = math.rsqrt %45 : vector<1x8xf32>
    %47 = arith.mulf %43, %46 : vector<1x8xf32>
    %c0_48 = arith.constant 0 : index
    %c0_49 = arith.constant 0 : index
    %48 = vector.load %arg4[%c0_48, %c0_49] : memref<1x8xf32, #tpu.memory_space<vmem>>, vector<1x8xf32>
    %49 = arith.mulf %38, %47 : vector<1x8xf32>
    %50 = arith.subf %48, %49 : vector<1x8xf32>
    %c0_50 = arith.constant 0 : index
    %c0_51 = arith.constant 0 : index
    %51 = vector.load %arg10[%c0_50, %c0_51] : memref<8x128xf32, #tpu.memory_space<vmem>>, vector<8x128xf32>
    %cst_52 = arith.constant dense<0.000000e+00> : vector<1x128xf32>
    %52 = tpu.matmul %47, %51, %cst_52 {dimension_numbers = #tpu.dot_dimension_numbers<[1], [0], [0], [1], [0, 0, 1, 1], [], []>} : vector<1x8xf32>, vector<8x128xf32>, vector<1x128xf32> -> vector<1x128xf32>
    %c0_53 = arith.constant 0 : index
    %c0_54 = arith.constant 0 : index
    %53 = vector.load %arg10[%c0_53, %c0_54] : memref<8x128xf32, #tpu.memory_space<vmem>>, vector<8x128xf32>
    %cst_55 = arith.constant dense<0.000000e+00> : vector<1x128xf32>
    %54 = tpu.matmul %50, %53, %cst_55 {dimension_numbers = #tpu.dot_dimension_numbers<[1], [0], [0], [1], [0, 0, 1, 1], [], []>} : vector<1x8xf32>, vector<8x128xf32>, vector<1x128xf32> -> vector<1x128xf32>
    %55 = vector.broadcast %52 : vector<1x128xf32> to vector<32x128xf32>
    %56 = arith.mulf %27, %55 : vector<32x128xf32>
    %57 = vector.broadcast %54 : vector<1x128xf32> to vector<32x128xf32>
    %58 = arith.addf %56, %57 : vector<32x128xf32>
    %cst_56 = arith.constant 0.000000e+00 : f32
    %59 = vector.broadcast %cst_56 : f32 to vector<32x128xf32>
    %60 = arith.maximumf %58, %59 : vector<32x128xf32>
    %cst_57 = arith.constant 0.000000e+00 : bf16
    %61 = vector.broadcast %cst_57 : bf16 to vector<2x1x128xbf16>
    %c0_58 = arith.constant 0 : index
    %c0_59 = arith.constant 0 : index
    %c0_60 = arith.constant 0 : index
    %62 = vector.load %arg13[%c0_58, %c0_59, %c0_60] : memref<2x18x128xbf16, #tpu.memory_space<vmem>>, vector<2x1x128xbf16>
    tpu.vector_store %arg13[%c0_58, %c0_59, %c0_60], %61 {strides = array<i32>} : memref<2x18x128xbf16, #tpu.memory_space<vmem>>, vector<2x1x128xbf16>,
    %cst_61 = arith.constant 0.000000e+00 : bf16
    %63 = vector.broadcast %cst_61 : bf16 to vector<2x1x128xbf16>
    %c0_62 = arith.constant 0 : index
    %c17_63 = arith.constant 17 : index
    %c0_64 = arith.constant 0 : index
    %64 = vector.load %arg13[%c0_62, %c17_63, %c0_64] : memref<2x18x128xbf16, #tpu.memory_space<vmem>>, vector<2x1x128xbf16>
    tpu.vector_store %arg13[%c0_62, %c17_63, %c0_64], %63 {strides = array<i32>} : memref<2x18x128xbf16, #tpu.memory_space<vmem>>, vector<2x1x128xbf16>,
    %65 = vector.shape_cast %60 : vector<32x128xf32> to vector<2x16x128xf32>
    %66 = arith.truncf %65 : vector<2x16x128xf32> to vector<2x16x128xbf16>
    %c0_65 = arith.constant 0 : index
    %c1_66 = arith.constant 1 : index
    %c0_67 = arith.constant 0 : index
    %67 = vector.load %arg13[%c0_65, %c1_66, %c0_67] : memref<2x18x128xbf16, #tpu.memory_space<vmem>>, vector<2x16x128xbf16>
    tpu.vector_store %arg13[%c0_65, %c1_66, %c0_67], %66 {strides = array<i32>} : memref<2x18x128xbf16, #tpu.memory_space<vmem>>, vector<2x16x128xbf16>,
    %c0_68 = arith.constant 0 : index
    %c0_69 = arith.constant 0 : index
    %c0_70 = arith.constant 0 : index
    %68 = vector.load %arg13[%c0_68, %c0_69, %c0_70] : memref<2x18x128xbf16, #tpu.memory_space<vmem>>, vector<2x16x128xbf16>
    %69 = vector.shape_cast %68 : vector<2x16x128xbf16> to vector<32x128xbf16>
    %c0_71 = arith.constant 0 : index
    %c0_72 = arith.constant 0 : index
    %c0_73 = arith.constant 0 : index
    %70 = vector.load %arg5[%c0_71, %c0_72, %c0_73] : memref<3x128x128xbf16, #tpu.memory_space<vmem>>, vector<1x128x128xbf16>
    %71 = vector.shape_cast %70 : vector<1x128x128xbf16> to vector<128x128xbf16>
    %cst_74 = arith.constant dense<0.000000e+00> : vector<32x128xf32>
    %72 = tpu.matmul %69, %71, %cst_74 {dimension_numbers = #tpu.dot_dimension_numbers<[1], [0], [0], [1], [0, 0, 1, 1], [], []>} : vector<32x128xbf16>, vector<128x128xbf16>, vector<32x128xf32> -> vector<32x128xf32>
    %c0_75 = arith.constant 0 : index
    %c1_76 = arith.constant 1 : index
    %c0_77 = arith.constant 0 : index
    %73 = vector.load %arg13[%c0_75, %c1_76, %c0_77] : memref<2x18x128xbf16, #tpu.memory_space<vmem>>, vector<2x16x128xbf16>
    %74 = vector.shape_cast %73 : vector<2x16x128xbf16> to vector<32x128xbf16>
    %c1_78 = arith.constant 1 : index
    %c0_79 = arith.constant 0 : index
    %c0_80 = arith.constant 0 : index
    %75 = vector.load %arg5[%c1_78, %c0_79, %c0_80] : memref<3x128x128xbf16, #tpu.memory_space<vmem>>, vector<1x128x128xbf16>
    %76 = vector.shape_cast %75 : vector<1x128x128xbf16> to vector<128x128xbf16>
    %cst_81 = arith.constant dense<0.000000e+00> : vector<32x128xf32>
    %77 = tpu.matmul %74, %76, %cst_81 {dimension_numbers = #tpu.dot_dimension_numbers<[1], [0], [0], [1], [0, 0, 1, 1], [], []>} : vector<32x128xbf16>, vector<128x128xbf16>, vector<32x128xf32> -> vector<32x128xf32>
    %78 = arith.addf %72, %77 : vector<32x128xf32>
    %c0_82 = arith.constant 0 : index
    %c2_83 = arith.constant 2 : index
    %c0_84 = arith.constant 0 : index
    %79 = vector.load %arg13[%c0_82, %c2_83, %c0_84] : memref<2x18x128xbf16, #tpu.memory_space<vmem>>, vector<2x16x128xbf16>
    %80 = vector.shape_cast %79 : vector<2x16x128xbf16> to vector<32x128xbf16>
    %c2_85 = arith.constant 2 : index
    %c0_86 = arith.constant 0 : index
    %c0_87 = arith.constant 0 : index
    %81 = vector.load %arg5[%c2_85, %c0_86, %c0_87] : memref<3x128x128xbf16, #tpu.memory_space<vmem>>, vector<1x128x128xbf16>
    %82 = vector.shape_cast %81 : vector<1x128x128xbf16> to vector<128x128xbf16>
    %cst_88 = arith.constant dense<0.000000e+00> : vector<32x128xf32>
    %83 = tpu.matmul %80, %82, %cst_88 {dimension_numbers = #tpu.dot_dimension_numbers<[1], [0], [0], [1], [0, 0, 1, 1], [], []>} : vector<32x128xbf16>, vector<128x128xbf16>, vector<32x128xf32> -> vector<32x128xf32>
    %84 = arith.addf %78, %83 : vector<32x128xf32>
    %c0_89 = arith.constant 0 : index
    %c0_90 = arith.constant 0 : index
    %85 = vector.load %arg6[%c0_89, %c0_90] : memref<1x8xf32, #tpu.memory_space<vmem>>, vector<1x8xf32>
    %c0_91 = arith.constant 0 : index
    %c0_92 = arith.constant 0 : index
    %86 = vector.load %arg10[%c0_91, %c0_92] : memref<8x128xf32, #tpu.memory_space<vmem>>, vector<8x128xf32>
    %cst_93 = arith.constant dense<0.000000e+00> : vector<1x128xf32>
    %87 = tpu.matmul %85, %86, %cst_93 {dimension_numbers = #tpu.dot_dimension_numbers<[1], [0], [0], [1], [0, 0, 1, 1], [], []>} : vector<1x8xf32>, vector<8x128xf32>, vector<1x128xf32> -> vector<1x128xf32>
    %88 = vector.broadcast %87 : vector<1x128xf32> to vector<32x128xf32>
    %89 = arith.addf %84, %88 : vector<32x128xf32>
    %cst_94 = arith.constant dense<0.000000e+00> : vector<128xf32>
    %90 = vector.multi_reduction <add>, %89, %cst_94 [0] : vector<32x128xf32> to vector<128xf32>
    %91 = vector.shape_cast %90 : vector<128xf32> to vector<1x128xf32>
    %c0_95 = arith.constant 0 : index
    %c0_96 = arith.constant 0 : index
    %92 = vector.load %arg9[%c0_95, %c0_96] : memref<128x8xf32, #tpu.memory_space<vmem>>, vector<128x8xf32>
    %cst_97 = arith.constant dense<0.000000e+00> : vector<1x8xf32>
    %93 = tpu.matmul %91, %92, %cst_97 {dimension_numbers = #tpu.dot_dimension_numbers<[1], [0], [0], [1], [0, 0, 1, 1], [], []>} : vector<1x128xf32>, vector<128x8xf32>, vector<1x8xf32> -> vector<1x8xf32>
    %94 = arith.mulf %89, %89 : vector<32x128xf32>
    %cst_98 = arith.constant dense<0.000000e+00> : vector<128xf32>
    %95 = vector.multi_reduction <add>, %94, %cst_98 [0] : vector<32x128xf32> to vector<128xf32>
    %96 = vector.shape_cast %95 : vector<128xf32> to vector<1x128xf32>
    %c0_99 = arith.constant 0 : index
    %c0_100 = arith.constant 0 : index
    %97 = vector.load %arg9[%c0_99, %c0_100] : memref<128x8xf32, #tpu.memory_space<vmem>>, vector<128x8xf32>
    %cst_101 = arith.constant dense<0.000000e+00> : vector<1x8xf32>
    %98 = tpu.matmul %96, %97, %cst_101 {dimension_numbers = #tpu.dot_dimension_numbers<[1], [0], [0], [1], [0, 0, 1, 1], [], []>} : vector<1x128xf32>, vector<128x8xf32>, vector<1x8xf32> -> vector<1x8xf32>
    %cst_102 = arith.constant 0.001953125 : f32
    %99 = vector.broadcast %cst_102 : f32 to vector<1x8xf32>
    %100 = arith.mulf %93, %99 : vector<1x8xf32>
    %cst_103 = arith.constant 0.001953125 : f32
    %101 = vector.broadcast %cst_103 : f32 to vector<1x8xf32>
    %102 = arith.mulf %98, %101 : vector<1x8xf32>
    %103 = arith.mulf %100, %100 : vector<1x8xf32>
    %104 = arith.subf %102, %103 : vector<1x8xf32>
    %c0_104 = arith.constant 0 : index
    %c0_105 = arith.constant 0 : index
    %105 = vector.load %arg7[%c0_104, %c0_105] : memref<1x8xf32, #tpu.memory_space<vmem>>, vector<1x8xf32>
    %cst_106 = arith.constant 9.99999974E-6 : f32
    %106 = vector.broadcast %cst_106 : f32 to vector<1x8xf32>
    %107 = arith.addf %104, %106 : vector<1x8xf32>
    %108 = math.rsqrt %107 : vector<1x8xf32>
    %109 = arith.mulf %105, %108 : vector<1x8xf32>
    %c0_107 = arith.constant 0 : index
    %c0_108 = arith.constant 0 : index
    %110 = vector.load %arg8[%c0_107, %c0_108] : memref<1x8xf32, #tpu.memory_space<vmem>>, vector<1x8xf32>
    %111 = arith.mulf %100, %109 : vector<1x8xf32>
    %112 = arith.subf %110, %111 : vector<1x8xf32>
    %c0_109 = arith.constant 0 : index
    %c0_110 = arith.constant 0 : index
    %113 = vector.load %arg10[%c0_109, %c0_110] : memref<8x128xf32, #tpu.memory_space<vmem>>, vector<8x128xf32>
    %cst_111 = arith.constant dense<0.000000e+00> : vector<1x128xf32>
    %114 = tpu.matmul %109, %113, %cst_111 {dimension_numbers = #tpu.dot_dimension_numbers<[1], [0], [0], [1], [0, 0, 1, 1], [], []>} : vector<1x8xf32>, vector<8x128xf32>, vector<1x128xf32> -> vector<1x128xf32>
    %c0_112 = arith.constant 0 : index
    %c0_113 = arith.constant 0 : index
    %115 = vector.load %arg10[%c0_112, %c0_113] : memref<8x128xf32, #tpu.memory_space<vmem>>, vector<8x128xf32>
    %cst_114 = arith.constant dense<0.000000e+00> : vector<1x128xf32>
    %116 = tpu.matmul %112, %115, %cst_114 {dimension_numbers = #tpu.dot_dimension_numbers<[1], [0], [0], [1], [0, 0, 1, 1], [], []>} : vector<1x8xf32>, vector<8x128xf32>, vector<1x128xf32> -> vector<1x128xf32>
    %117 = vector.broadcast %114 : vector<1x128xf32> to vector<32x128xf32>
    %118 = arith.mulf %89, %117 : vector<32x128xf32>
    %119 = vector.broadcast %116 : vector<1x128xf32> to vector<32x128xf32>
    %120 = arith.addf %118, %119 : vector<32x128xf32>
    %cst_115 = arith.constant 0.000000e+00 : f32
    %121 = vector.broadcast %cst_115 : f32 to vector<32x128xf32>
    %122 = arith.maximumf %120, %121 : vector<32x128xf32>
    %c0_116 = arith.constant 0 : index
    %c0_117 = arith.constant 0 : index
    %123 = vector.load %arg11[%c0_116, %c0_117] : memref<32x128xf32, #tpu.memory_space<vmem>>, vector<32x128xf32>
    tpu.vector_store %arg11[%c0_116, %c0_117], %122 {strides = array<i32>} : memref<32x128xf32, #tpu.memory_space<vmem>>, vector<32x128xf32>,
    return
  }
}

</mosaic_0001>

<bundles_post_ra>
// kernel: tpu_custom_call.1
= control target key start
LH: loop header
LB: loop body
LE: loop exit
PB: predicated region body
PF: predicated region fallthrough
CT: control target
= control target key end

     0   :  { %16 = vsyncpa [#allocation5], 0  ;;  %s3195_s0 = inlined_call_operand.vmem [shape: bf16[2,16,64], index: 0, kind: input, shape index: {}]   ;;  %s3196_s1 = inlined_call_operand.vmem [shape: bf16[3,64,128], index: 1, kind: input, shape index: {}]   ;;  %s3197_s2 = inlined_call_operand.vmem [shape: f32[1,8], index: 2, kind: input, shape index: {}]   ;;  %s3198_s3 = inlined_call_operand.vmem [shape: f32[1,8], index: 3, kind: input, shape index: {}]   ;;  %s3199_s4 = inlined_call_operand.vmem [shape: f32[1,8], index: 4, kind: input, shape index: {}]   ;;  %s3200_s5 = inlined_call_operand.hbm [shape: bf16[3,128,128], index: 5, kind: input, shape index: {}]   ;;  %s3201_s6 = inlined_call_operand.vmem [shape: f32[1,8], index: 6, kind: input, shape index: {}]   ;;  %s3202_s7 = inlined_call_operand.vmem [shape: f32[1,8], index: 7, kind: input, shape index: {}]   ;;  %s3203_s8 = inlined_call_operand.vmem [shape: f32[1,8], index: 8, kind: input, shape index: {}]   ;;  %s3204_s9 = inlined_call_operand.vmem [shape: f32[128,8], index: 9, kind: input, shape index: {}]   ;;  %s3205_s10 = inlined_call_operand.vmem [shape: f32[8,128], index: 10, kind: input, shape index: {}]   ;;  %s3206_s11 = inlined_call_operand.hbm [shape: f32[32,128], index: 11, kind: output, shape index: {}]  }
   0x1   :  { %17 = vsyncpa [#allocation6], 0  ;;  %s2628_s17 = smov [#allocation4]   ;;  %s2580_s21 = scalar_lea.hbm %s3200_s5, 3072 }
   0x2   :  { %s33_s18 = sshll.u32 %s2628_s17, 4  ;;  %p2581_p0 = scmp.ne.s32.totalorder %s3200_s5, %s2580_s21  ;;  %s34_s18 = int_to_ptr.vmem [resolvable:$true] %s33_s18 }
   0x3   :  { %p2584_p1 = scmp.lt.u32.totalorder %s2580_s21, %s3200_s5 }
   0x5   :  { %p2586_p2 = pnand %p2584_p1, %p2581_p0 }
   0x7   :  { %2589 = shalt.err (!%p2586_p2)
}
   0x8   :  { %s2590_s26 = scalar_lea.vmem %s34_s18, 3072  ;;  %p2595_p4 = scmp.lt.s32.totalorder %s34_s18, %s34_s18 }
   0x9   :  { %p2591_p3 = scmp.ne.s32.totalorder %s34_s18, %s2590_s26  ;;  %p2596_p5 = scmp.lt.s32.totalorder %s2590_s26, %s2590_s26 }
   0xb   :  { %p2597_p6 = por %p2596_p5, %p2595_p4 }
   0xd   :  { %p2598_p7 = pnand %p2597_p6, %p2591_p3 }
   0xf   :  { %2601 = shalt.err (!%p2598_p7)
}
  0x10   :  { %s2629_s27 = smov 64   ;;  %s2630_s28 = smov 4  }
  0x11   :  { %39 = dma.hbm_to_vmem [thread:$0]  %s3200_s5, 3072, %s34_s18, [#allocation5], %s2629_s27, %s2629_s27, %s2630_s28  }
  0x12   :  { %2624 = dma.done.wait [#allocation5], 3072  }
  0x13   :  { %2625 = vsyncadd [#allocation5], 4294964224  ;;  %vm54_vm0 = vcmask 516096   ;;  %vm55_vm1 = vsmask.f32 256  ;;  %v2631_v0 = vmov 0.0  }
  0x14   :  { %2184 = vmatprep.subr.mxu1 %v2631_v0  ;;  %vm2632_vm2 = vmmov 0   ;;  %vm2713_vm3 = vmand %vm54_vm0, %vm55_vm1  ;;  %vm63_vm4 = vsmask.f32 7938  ;;  %v2535_v2 = vld [vmem:[%s3196_s1 + $0x20] sm:$0xff]   ;;  %v2536_v3 = vld [vmem:[%s3196_s1 + $0x28] sm:$0xff]   ;;  %vm117_vm7 = vcmask 519168  }
  0x15   :  { %2186 = vmatprep.mubr.msk.f32.mxu1 %vm2632_vm2, %v2631_v0  ;;  %2148 = vmatprep.subr.bf16.mxu0 %v2535_v2  ;;  %vm2724_vm5 = vmand %vm54_vm0, %vm63_vm4  ;;  %vm75_vm6 = vsmask.f32 4368  ;;  %v2537_v5 = vld [vmem:[%s3196_s1 + $0x30] sm:$0xff]   ;;  %v57_v6 = vld [vmem:[#allocation2] sm:$0x1]  ;;  %vm506_vm10 = vcmask 64512  }
  0x16   :  { %2149 = vmatpush3.bf16.msra.mxu0 %v2535_v2  ;;  %v60_v7 = vld [vmem:[#allocation2 + $0xc] sm:$0x1]  ;;  %v65_v8 = vld [vmem:[#allocation2 + $0x8] sm:$0x1]  ;;  %v58_v9 = vsel %vm2713_vm3, 0, %v57_v6  ;;  %v2538_v13 = vld [vmem:[%s3196_s1 + $0x38] sm:$0xff]  }
  0x17   :  { %2150 = vmatprep.subr.bf16.mxu0 %v2536_v3  ;;  %v61_v10 = vsel %vm2713_vm3, 0, %v60_v7  ;;  %v66_v11 = vsel %vm2724_vm5, 0, %v65_v8  ;;  %v68_v12 = vld [vmem:[#allocation2 + $0x14] sm:$0x1]  ;;  %59 = vst [vmem:[#allocation2] sm:$0x1] %v58_v9  ;;  %vm2756_vm8 = vmor %vm55_vm1, %vm75_vm6 }
  0x18   :  { %62 = vst [vmem:[#allocation2 + $0xc] sm:$0x1] %v61_v10  ;;  %67 = vst [vmem:[#allocation2 + $0x8] sm:$0x1] %v66_v11  ;;  %v69_v14 = vsel %vm2724_vm5, 0, %v68_v12  ;;  %v2763_v31 = vld [vmem:[%s3196_s1] sm:$0xff]  }
  0x19   :  { %v71_v15 = vld [vmem:[%s3195_s0] sm:$0xf]  ;;  %v72_v16 = vld [vmem:[%s3195_s0 + $0x4] sm:$0xf]  ;;  %v73_v17 = vld [vmem:[%s3195_s0 + $0x8] sm:$0xf] }
  0x1a   :  { %2151 = vmatpush3.bf16.msra.mxu0 %v2536_v3  ;;  %v74_v18 = vld [vmem:[%s3195_s0 + $0xc] sm:$0xf]  ;;  %v78_v19 = vshrl.u32 %v71_v15, 16  ;;  %v81_v20 = vshll.u32 %v71_v15, 16  ;;  %70 = vst [vmem:[#allocation2 + $0x14] sm:$0x1] %v69_v14  ;;  %vm2767_vm9 = vmand %vm117_vm7, %vm63_vm4 }
  0x1b   :  { %2152 = vmatprep.subr.bf16.mxu0 %v2537_v5  ;;  %v86_v21 = vshrl.u32 %v72_v16, 16  ;;  %v89_v22 = vshll.u32 %v72_v16, 16  ;;  %v95_v23 = vshrl.u32 %v73_v17, 16  ;;  %v98_v24 = vshll.u32 %v73_v17, 16  ;;  %v2789_v52 = vld [vmem:[%s3205_s10] sm:$0xff]  ;;  %v598_v55 = vld [vmem:[%s3204_s9 + $0x8] sm:$0xff] }
  0x1c   :  { %v80_v25 = vrot.slane %v78_v19, 7  ;;  %v103_v26 = vshrl.u32 %v74_v18, 16  ;;  %v106_v27 = vshll.u32 %v74_v18, 16  ;;  %vm148_vm11 = vsmask.f32 3328  ;;  %2185 = vmatpush3.msra.mxu1 %v2789_v52  ;;  %v597_v54 = vld [vmem:[%s3204_s9] sm:$0xff] }
  0x1d   :  { %v88_v29 = vrot.slane %v86_v21, 7  ;;  %v97_v30 = vrot.slane %v95_v23, 7  ;;  %v504_v53 = vld [vmem:[%s3197_s2] sm:$0x1]  ;;  %vm149_vm12 = vsmask.f32 7440  ;;  %v2803_v57 = vpack.c.bf16 %v598_v55, %v597_v54 }
  0x1e   :  { %2153 = vmatpush3.bf16.msra.mxu0 %v2537_v5  ;;  %v83_v32 = vor.u32 %v81_v20, %v80_v25  ;;  %v84_v33 = vrot.slane %v80_v25, 4  ;;  %v105_v34 = vrot.slane %v103_v26, 7  ;;  %v119_v41 = vld [vmem:[#allocation2] sm:$0xf]  ;;  %2187 = vmatmul.mubr.msk.f32.vlgmr.msra.gmra.mrb[0].mxu1 %vm506_vm10, %v504_v53  ;;  %v2633_v56 = vmov 0.0|0.0   ;;  %v599_v58 = vld [vmem:[%s3204_s9 + $0x10] sm:$0xff]  ;;  %vm2839_vm13 = vmor %vm148_vm11, %vm149_vm12 }
  0x1f   :  { %2154 = vmatprep.subr.bf16.mxu0 %v2538_v13  ;;  %v91_v36 = vor.u32 %v89_v22, %v88_v29  ;;  %v93_v37 = vrot.slane %v88_v29, 4  ;;  %v100_v38 = vor.u32 %v98_v24, %v97_v30  ;;  %v101_v39 = vrot.slane %v97_v30, 4  ;;  %v124_v42 = vld [vmem:[#allocation2 + $0x8] sm:$0x1]  ;;  %v127_v43 = vld [vmem:[#allocation2 + $0xc] sm:$0xf]  ;;  %2414 = vmatprep.subr.bf16.mxu1 %v2633_v56 }
  0x20   :  { %v108_v40 = vor.u32 %v106_v27, %v105_v34  ;;  %v120_v45 = vsel %vm2767_vm9, %v83_v32, %v119_v41  ;;  %v110_v50 = vrot.slane %v105_v34, 4  ;;  %v600_v59 = vld [vmem:[%s3204_s9 + $0x18] sm:$0xff]  ;;  %2221 = vmatprep.mubr.msk.f32.mxu1 %vm2632_vm2, %v2631_v0  ;;  %2416 = vmatpush3.bf16.msra.mxu1 %v2803_v57  ;;  %vm238_vm14 = vcmask 523264   ;;  %v2560_v23 = vld [vmem:[#allocation4 + $0x10] sm:$0xff]  }
  0x21   :  { %v92_v44 = vsel %vm2756_vm8, %v84_v33, %v91_v36  ;;  %v125_v46 = vsel %vm2713_vm3, %v93_v37, %v124_v42  ;;  %v128_v47 = vsel %vm2767_vm9, %v100_v38, %v127_v43  ;;  %v131_v48 = vld [vmem:[#allocation2 + $0x14] sm:$0x1]  ;;  %121 = vst [vmem:[#allocation2] sm:$0xf] %v120_v45  ;;  %v2818_v63 = vpack.c.bf16 %v600_v59, %v599_v58  ;;  %v2540_v42 = vld [vmem:[%s3196_s1 + $0x8] sm:$0xff]  }
  0x22   :  { %2155 = vmatpush3.bf16.msra.mxu0 %v2538_v13  ;;  %v109_v49 = vsel %vm2756_vm8, %v101_v39, %v108_v40  ;;  %123 = vst.msk [vmem:[#allocation2 + $0x4] sm:$0xf] %vm117_vm7, %v92_v44  ;;  %126 = vst [vmem:[#allocation2 + $0x8] sm:$0x1] %v125_v46  ;;  %v132_v51 = vsel %vm2713_vm3, %v110_v50, %v131_v48  ;;  %2417 = vmatprep.subr.bf16.mxu1 %v2633_v56  ;;  %vm389_vm15 = vcmask 1042432   ;;  %vm390_vm0 = vcmask 1046532  }
  0x23   :  { %129 = vst [vmem:[#allocation2 + $0xc] sm:$0xf] %v128_v47  ;;  %130 = vst.msk [vmem:[#allocation2 + $0x10] sm:$0xf] %vm117_vm7, %v109_v49  ;;  %2160 = vmatprep.subr.bf16.mxu0 %v2763_v31  ;;  %v2541_v48 = vld [vmem:[%s3196_s1 + $0x10] sm:$0xff]   ;;  %v2542_v49 = vld [vmem:[%s3196_s1 + $0x18] sm:$0xff]  }
  0x24   :  { %133 = vst [vmem:[#allocation2 + $0x14] sm:$0x1] %v132_v51  ;;  %2419 = vmatpush3.bf16.msra.mxu1 %v2818_v63  ;;  %vm2868_vm3 = vmor %vm389_vm15, %vm390_vm0  ;;  %v2546_v58 = vld [vmem:[%s3196_s1 + $0x48] sm:$0xff]   ;;  %vm943_vm5 = vcmask 1040384   ;;  %v2573_v50 = vld [vmem:[#allocation4 + $0xb0] sm:$0xff]  }
  0x25   :  { %2420 = vmatprep.subr.bf16.mxu1 %v2633_v56  ;;  %vm3021_vm6 = vmand %vm943_vm5, %vm55_vm1  ;;  %vm1010_vm1 = vcmask 1043456  }
  0x26   :  { %vm951_vm7 = vmand %vm943_vm5, %vm63_vm4 }
  0x27   :  { %vm3062_vm9 = vmand %vm1010_vm1, %vm63_vm4 }
  0x28   :  { %v134_v60 = vld [vmem:[#allocation2] sm:$0xf] }
  0x29   :  { %v2813_v61 = vld [vmem:[#allocation2 + $0x4] sm:$0xf]  ;;  %v2815_v62 = vld [vmem:[#allocation2 + $0x8] sm:$0x1]  ;;  %v152_v1 = vshrl.u32 %v134_v60, 16  ;;  %v155_v2 = vshll.u32 %v134_v60, 16 }
  0x2a   :  { %v161_v3 = vshll.u32 %v2813_v61, 16  ;;  %v165_v4 = vshrl.u32 %v2813_v61, 16  ;;  %v2822_v5 = vld [vmem:[#allocation2 + $0xc] sm:$0xf]  ;;  %v171_v6 = vshll.u32 %v2815_v62, 16  ;;  %v394_v36 = vrot.slane %v2813_v61, 5 }
  0x2b   :  { %v2826_v7 = vld [vmem:[#allocation2 + $0x10] sm:$0xf]  ;;  %v176_v8 = vshrl.u32 %v2822_v5, 16  ;;  %v179_v9 = vshll.u32 %v2822_v5, 16  ;;  %v154_v10 = vrot.slane %v152_v1, 4  ;;  %v157_v11 = vrot.slane %v155_v2, 5 }
  0x2c   :  { %v163_v12 = vrot.slane %v161_v3, 5  ;;  %v167_v13 = vrot.slane %v165_v4, 4  ;;  %v2830_v14 = vld [vmem:[#allocation2 + $0x14] sm:$0x1]  ;;  %v173_v15 = vrot.slane %v171_v6, 5  ;;  %v185_v18 = vshll.u32 %v2826_v7, 16 }
  0x2d   :  { %v178_v16 = vrot.slane %v176_v8, 4  ;;  %v181_v17 = vrot.slane %v179_v9, 5  ;;  %v158_v19 = vor.u32 %v157_v11, %v154_v10  ;;  %v189_v21 = vshrl.u32 %v2826_v7, 16  ;;  %v383_v38 = vld [vmem:[#allocation2] sm:$0xe]  ;;  %v2548_v3 = vld [vmem:[%s3196_s1 + $0x58] sm:$0xff]  }
  0x2e   :  { %v168_v20 = vor.u32 %v167_v13, %v163_v12  ;;  %v195_v22 = vshll.u32 %v2830_v14, 16  ;;  %v187_v25 = vrot.slane %v185_v18, 5  ;;  %v397_v39 = vrot.slane %v2815_v62, 5  ;;  %v602_v8 = vld [vmem:[%s3204_s9 + $0x28] sm:$0xff]  ;;  %v603_v10 = vld [vmem:[%s3204_s9 + $0x30] sm:$0xff]  ;;  %v604_v11 = vld [vmem:[%s3204_s9 + $0x38] sm:$0xff] }
  0x2f   :  { %v182_v24 = vor.u32 %v181_v17, %v178_v16  ;;  %v159_v26 = vrot.slane %v158_v19, 4  ;;  %v191_v29 = vrot.slane %v189_v21, 4  ;;  %v1948_v44 = vcombine.low %v134_v60, %v2813_v61  ;;  %v2547_v60 = vld [vmem:[%s3196_s1 + $0x50] sm:$0xff]   ;;  %v384_v61 = vld [vmem:[#allocation2 + $0xc] sm:$0xe]  ;;  %v605_v13 = vld [vmem:[%s3204_s9 + $0x40] sm:$0xff] }
  0x30   :  { %v169_v27 = vrot.slane %v168_v20, 4  ;;  %v197_v32 = vrot.slane %v195_v22, 5  ;;  %v1956_v45 = vrot.slane %v383_v38, 9  ;;  %v396_v46 = vrot.slane %v394_v36, 4  ;;  %v607_v16 = vld [vmem:[%s3204_s9 + $0x50] sm:$0xff]  ;;  %v608_v17 = vld [vmem:[%s3204_s9 + $0x58] sm:$0xff] }
  0x31   :  { %v183_v30 = vrot.slane %v182_v24, 4  ;;  %v164_v33 = vsel %vm2839_vm13, %v159_v26, %v163_v12  ;;  %v192_v35 = vor.u32 %v191_v29, %v187_v25  ;;  %v1949_v54 = vcombine.low %v2822_v5, %v2826_v7  ;;  %v609_v19 = vld [vmem:[%s3204_s9 + $0x60] sm:$0xff]  ;;  %v610_v20 = vld [vmem:[%s3204_s9 + $0x68] sm:$0xff]  ;;  %v611_v22 = vld [vmem:[%s3204_s9 + $0x70] sm:$0xff] }
  0x32   :  { %v174_v34 = vsel %vm2839_vm13, %v169_v27, %v173_v15  ;;  %v395_v51 = vsel %vm2868_vm3, %v1956_v45, %v394_v36  ;;  %v398_v53 = vsel %vm2868_vm3, %v396_v46, %v397_v39  ;;  %v401_v59 = vrot.slane %v2826_v7, 5  ;;  %v601_v7 = vld [vmem:[%s3204_s9 + $0x20] sm:$0xff]  ;;  %v612_v24 = vld [vmem:[%s3204_s9 + $0x78] sm:$0xff] }
  0x33   :  { %v1940_v37 = vcombine.low %v164_v33, %v174_v34  ;;  %v188_v40 = vsel %vm2839_vm13, %v183_v30, %v187_v25  ;;  %v193_v41 = vrot.slane %v192_v35, 4  ;;  %v1966_v55 = vcombine.low %v395_v51, %v398_v53 }
  0x34   :  { %v404_v62 = vrot.slane %v2830_v14, 5  ;;  %v1957_v1 = vrot.slane %v384_v61, 9  ;;  %v403_v2 = vrot.slane %v401_v59, 4  ;;  %v2905_v9 = vpack.c.bf16 %v602_v8, %v601_v7  ;;  %v606_v14 = vld [vmem:[%s3204_s9 + $0x48] sm:$0xff] }
  0x35   :  { %2156 = vmatprep.mubr.msk.bf16.mxu0 %vm238_vm14, %v1940_v37  ;;  %v198_v43 = vsel %vm2839_vm13, %v193_v41, %v197_v32  ;;  %v2915_v12 = vpack.c.bf16 %v604_v11, %v603_v10  ;;  %v2925_v15 = vpack.c.bf16 %v606_v14, %v605_v13  ;;  %v2935_v18 = vpack.c.bf16 %v608_v17, %v607_v16  ;;  %v770_v17 = vld [vmem:[%s3198_s3] sm:$0x1] }
  0x36   :  { %v1941_v47 = vcombine.low %v188_v40, %v198_v43  ;;  %v402_v4 = vsel %vm2868_vm3, %v1957_v1, %v401_v59  ;;  %v405_v5 = vsel %vm2868_vm3, %v403_v2, %v404_v62  ;;  %2422 = vmatpush3.bf16.msra.mxu1 %v2905_v9  ;;  %v2945_v21 = vpack.c.bf16 %v610_v20, %v609_v19 }
  0x37   :  { %v1967_v6 = vcombine.low %v402_v4, %v405_v5  ;;  %2423 = vmatprep.subr.bf16.mxu1 %v2633_v56  ;;  %v2954_v25 = vpack.c.bf16 %v612_v24, %v611_v22  ;;  %v580_v29 = vlaneseq  ;;  %v774_v22 = vld [vmem:[%s3199_s4] sm:$0x1] }
  0x38   :  { %2157 = vmatmul.mubr.msk.bf16.vlgmr.msra.gmra.mrb[0].mxu0 %vm238_vm14, %v1941_v47 }
  0x39   :  { %2161 = vmatpush3.bf16.msra.mxu0 %v2763_v31  ;;  %2168 = vmatprep.mubr.msk.bf16.mxu0 %vm238_vm14, %v1948_v44  ;;  %v2544_v31 = vld [vmem:[%s3196_s1 + $0x40] sm:$0xff]   ;;  %v581_v30 = vshrl.u32 %v580_v29, 7 }
  0x3a   :  { %2162 = vmatprep.subr.bf16.mxu0 %v2540_v42  ;;  %2425 = vmatpush3.bf16.msra.mxu1 %v2915_v12 }
  0x3b   :  { %2426 = vmatprep.subr.bf16.mxu1 %v2633_v56  ;;  %v2959_v32 = vsub.s32 0, %v581_v30  ;;  %v945_v30 = vld [vmem:[#allocation3] sm:$0x1] }
  0x3d   :  { %2163 = vmatpush3.bf16.msra.mxu0 %v2540_v42 }
  0x3e   :  { %2164 = vmatprep.subr.bf16.mxu0 %v2541_v48  ;;  %2428 = vmatpush3.bf16.msra.mxu1 %v2925_v15 }
  0x3f   :  { %2429 = vmatprep.subr.bf16.mxu1 %v2633_v56 }
  0x41   :  { %2165 = vmatpush3.bf16.msra.mxu0 %v2541_v48 }
  0x42   :  { %2166 = vmatprep.subr.bf16.mxu0 %v2542_v49  ;;  %2431 = vmatpush3.bf16.msra.mxu1 %v2935_v18 }
  0x43   :  { %2432 = vmatprep.subr.bf16.mxu1 %v2633_v56 }
  0x45   :  { %2167 = vmatpush3.bf16.msra.mxu0 %v2542_v49 }
  0x46   :  { %2172 = vmatprep.subr.bf16.mxu0 %v2544_v31  ;;  %2434 = vmatpush3.bf16.msra.mxu1 %v2945_v21 }
  0x47   :  { %2435 = vmatprep.subr.bf16.mxu1 %v2633_v56 }
  0x48   :  { %2169 = vmatmul.mubr.msk.bf16.vlgmr.msra.gmra.mrb[0].mxu0 %vm238_vm14, %v1949_v54 }
  0x49   :  { %2173 = vmatpush3.bf16.msra.mxu0 %v2544_v31  ;;  %2180 = vmatprep.mubr.msk.bf16.mxu0 %vm238_vm14, %v1966_v55 }
  0x4a   :  { %2174 = vmatprep.subr.bf16.mxu0 %v2546_v58  ;;  %2437 = vmatpush3.bf16.msra.mxu1 %v2954_v25 }
  0x4b   :  { %2438 = vmatprep.subr.bf16.mxu1 %v2633_v56 }
  0x4d   :  { %2175 = vmatpush3.bf16.msra.mxu0 %v2546_v58 }
  0x4e   :  { %2176 = vmatprep.subr.bf16.mxu0 %v2547_v60 }
  0x51   :  { %2177 = vmatpush3.bf16.msra.mxu0 %v2547_v60 }
  0x52   :  { %2178 = vmatprep.subr.bf16.mxu0 %v2548_v3 }
  0x55   :  { %2179 = vmatpush3.bf16.msra.mxu0 %v2548_v3 }
  0x58   :  { %2181 = vmatmul.mubr.msk.bf16.vlgmr.msra.gmra.mrb[0].mxu0 %vm238_vm14, %v1967_v6 }
  0xf1   :  { %v576_v26 = vpop.f32.mrb[0].mxu1 }
  0xf2   :  { %v2188_v27 = vpop.f32.mrb[1].mxu1  ;;  %v583_v33 = vrot.slane %v576_v26, %v2959_v32 }
  0xf3   :  { %v2549_v27 = vld [vmem:[#allocation4 + $0x40] sm:$0xff]  }
  0xf4   :  { %2269 = vmatprep.subr.bf16.mxu0 %v2549_v27 }
  0xf5   :  { %2270 = vmatpush3.bf16.msra.mxu0 %v2549_v27 }
 0x12b   :  { %v2182_v34 = vpop.f32.mrb[0].mxu0 }
 0x12c   :  { %v2962_v35 = vadd.f32 %v2182_v34, %v583_v33  ;;  %v485_v36 = vpop.f32.mrb[1].mxu0  ;;  %v946_v34 = vsel %vm3021_vm6, 0, %v945_v30 }
 0x12d   :  { %v2964_v37 = vadd.f32 %v583_v33, %v485_v36  ;;  %v2183_v38 = vpop.f32.mrb[2].mxu0  ;;  %v952_v36 = vld [vmem:[#allocation3 + $0x8] sm:$0x1]  ;;  %947 = vst [vmem:[#allocation3] sm:$0x1] %v946_v34 }
 0x12e   :  { %v2966_v39 = vadd.f32 %v2183_v38, %v583_v33  ;;  %v488_v40 = vpop.f32.mrb[3].mxu0  ;;  %v685_v55 = vmul.f32 %v2962_v35, %v2962_v35  ;;  %v955_v38 = vld [vmem:[#allocation3 + $0x14] sm:$0x1] }
 0x12f   :  { %v2968_v41 = vadd.f32 %v583_v33, %v488_v40  ;;  %v683_v31 = vmul.f32 %v2964_v37, %v2964_v37  ;;  %v948_v33 = vld [vmem:[#allocation3 + $0xc] sm:$0x1]  ;;  %v953_v40 = vsel %vm951_vm7, 0, %v952_v36 }
 0x130   :  { %v686_v59 = vmul.f32 %v2966_v39, %v2966_v39  ;;  %954 = vst [vmem:[#allocation3 + $0x8] sm:$0x1] %v953_v40 }
 0x131   :  { %v588_v42 = vadd.f32 %v2968_v41, %v2964_v37  ;;  %v684_v48 = vmul.f32 %v2968_v41, %v2968_v41 }
 0x133   :  { %v589_v43 = vadd.f32 %v588_v42, %v2962_v35  ;;  %v687_v53 = vadd.f32 %v684_v48, %v683_v31  ;;  %v956_v42 = vsel %vm951_vm7, 0, %v955_v38  ;;  %v2555_v48 = vld [vmem:[#allocation4 + $0x70] sm:$0xff]   ;;  %v3030_v31 = vld [vmem:[#allocation4] sm:$0xff]  }
 0x134   :  { %957 = vst [vmem:[#allocation3 + $0x14] sm:$0x1] %v956_v42 }
 0x135   :  { %v590_v44 = vadd.f32 %v589_v43, %v2966_v39  ;;  %v688_v58 = vadd.f32 %v687_v53, %v685_v55  ;;  %v2550_v43 = vld [vmem:[#allocation4 + $0x48] sm:$0xff]  }
 0x136   :  { %2271 = vmatprep.subr.bf16.mxu0 %v2550_v43 }
 0x137   :  { %v591_v45 = vrot.slane %v590_v44, 4  ;;  %v689_v60 = vadd.f32 %v688_v58, %v686_v59  ;;  %2272 = vmatpush3.bf16.msra.mxu0 %v2550_v43  ;;  %v1016_v36 = vld [vmem:[#allocation3 + $0x8] sm:$0x1] }
 0x139   :  { %v592_v46 = vadd.f32 %v591_v45, %v590_v44  ;;  %v690_v61 = vrot.slane %v689_v60, 4  ;;  %v2551_v44 = vld [vmem:[#allocation4 + $0x50] sm:$0xff]   ;;  %v2552_v45 = vld [vmem:[#allocation4 + $0x58] sm:$0xff]  }
 0x13a   :  { %2273 = vmatprep.subr.bf16.mxu0 %v2551_v44 }
 0x13b   :  { %v593_v47 = vrot.slane %v592_v46, 2  ;;  %v691_v62 = vadd.f32 %v690_v61, %v689_v60  ;;  %2274 = vmatpush3.bf16.msra.mxu0 %v2551_v44 }
 0x13c   :  { %2275 = vmatprep.subr.bf16.mxu0 %v2552_v45 }
 0x13d   :  { %v594_v49 = vadd.f32 %v593_v47, %v592_v46  ;;  %v692_v1 = vrot.slane %v691_v62, 2  ;;  %v2553_v46 = vld [vmem:[#allocation4 + $0x60] sm:$0xff]   ;;  %v2554_v47 = vld [vmem:[#allocation4 + $0x68] sm:$0xff]  }
 0x13f   :  { %v595_v51 = vrot.slane %v594_v49, 1  ;;  %v693_v2 = vadd.f32 %v692_v1, %v691_v62  ;;  %2276 = vmatpush3.bf16.msra.mxu0 %v2552_v45  ;;  %v1023_v45 = vld [vmem:[#allocation3 + $0x14] sm:$0x1] }
 0x140   :  { %2277 = vmatprep.subr.bf16.mxu0 %v2553_v46 }
 0x141   :  { %v596_v54 = vadd.f32 %v595_v51, %v594_v49  ;;  %v694_v3 = vrot.slane %v693_v2, 1  ;;  %v2556_v49 = vld [vmem:[#allocation4 + $0x78] sm:$0xff]   ;;  %v1473_v51 = vld [vmem:[%s3201_s6] sm:$0x1] }
 0x143   :  { %2222 = vmatmul.mubr.f32.vlgmr.msra.gmra.mrb[2].mxu1 %v596_v54  ;;  %v695_v4 = vadd.f32 %v694_v3, %v693_v2  ;;  %2278 = vmatpush3.bf16.msra.mxu0 %v2553_v46 }
 0x144   :  { %2440 = vmatpush3.bf16.msra.mxu1 %v2803_v57  ;;  %2256 = vmatprep.mubr.msk.f32.mxu1 %vm2632_vm2, %v2631_v0 }
 0x145   :  { %2441 = vmatprep.subr.bf16.mxu1 %v2633_v56  ;;  %2279 = vmatprep.subr.bf16.mxu0 %v2554_v47 }
 0x147   :  { %2280 = vmatpush3.bf16.msra.mxu0 %v2554_v47 }
 0x148   :  { %2443 = vmatpush3.bf16.msra.mxu1 %v2818_v63  ;;  %2281 = vmatprep.subr.bf16.mxu0 %v2555_v48 }
 0x149   :  { %2444 = vmatprep.subr.bf16.mxu1 %v2633_v56 }
 0x14b   :  { %2282 = vmatpush3.bf16.msra.mxu0 %v2555_v48 }
 0x14c   :  { %2446 = vmatpush3.bf16.msra.mxu1 %v2905_v9  ;;  %2283 = vmatprep.subr.bf16.mxu0 %v2556_v49 }
 0x14d   :  { %2447 = vmatprep.subr.bf16.mxu1 %v2633_v56 }
 0x14f   :  { %2284 = vmatpush3.bf16.msra.mxu0 %v2556_v49 }
 0x150   :  { %2449 = vmatpush3.bf16.msra.mxu1 %v2915_v12  ;;  %2289 = vmatprep.subr.bf16.mxu0 %v3030_v31 }
 0x151   :  { %2450 = vmatprep.subr.bf16.mxu1 %v2633_v56 }
 0x154   :  { %2452 = vmatpush3.bf16.msra.mxu1 %v2925_v15 }
 0x155   :  { %2453 = vmatprep.subr.bf16.mxu1 %v2633_v56 }
 0x158   :  { %2455 = vmatpush3.bf16.msra.mxu1 %v2935_v18 }
 0x159   :  { %2456 = vmatprep.subr.bf16.mxu1 %v2633_v56 }
 0x15c   :  { %2458 = vmatpush3.bf16.msra.mxu1 %v2945_v21 }
 0x15d   :  { %2459 = vmatprep.subr.bf16.mxu1 %v2633_v56 }
 0x160   :  { %2461 = vmatpush3.bf16.msra.mxu1 %v2954_v25 }
 0x161   :  { %2259 = vmatprep.subr.mxu1 %v2631_v0 }
 0x163   :  { %2257 = vmatmul.mubr.f32.vlgmr.msra.gmra.mrb[4].mxu1 %v695_v4 }
 0x164   :  { %2260 = vmatpush3.msra.mxu1 %v2789_v52  ;;  %2261 = vmatprep.mubr.msk.f32.mxu1 %vm2632_vm2, %v2631_v0 }
 0x165   :  { %2264 = vmatprep.subr.mxu1 %v2631_v0 }
 0x216   :  { %v679_v5 = vpop.f32.mrb[2].mxu1 }
 0x217   :  { %v2223_v6 = vpop.f32.mrb[3].mxu1  ;;  %v766_v7 = vmul.f32 0.001953125, %v679_v5 }
 0x219   :  { %v768_v10 = vmul.f32 %v766_v7, %v766_v7 }
 0x236   :  { %v762_v8 = vpop.f32.mrb[4].mxu1 }
 0x237   :  { %v767_v11 = vmul.f32 0.001953125, %v762_v8  ;;  %v2258_v13 = vpop.f32.mrb[5].mxu1 }
 0x239   :  { %v769_v14 = vsub.f32 %v767_v11, %v768_v10 }
 0x23b   :  { %v771_v16 = vadd.f32 1e-05, %v769_v14 }
 0x23d   :  { %2575 = vrsqrt.f32 %v771_v16 }
 0x247   :  { %v2576_v19 = vpop.eup %2575 }
 0x248   :  { %v773_v20 = vmul.f32 %v2576_v19, %v770_v17 }
 0x24a   :  { %2262 = vmatmul.mubr.msk.f32.vlgmr.msra.gmra.mrb[6].mxu1 %vm506_vm10, %v773_v20  ;;  %v775_v24 = vmul.f32 %v773_v20, %v766_v7 }
 0x24b   :  { %2265 = vmatpush3.msra.mxu1 %v2789_v52  ;;  %2266 = vmatprep.mubr.msk.f32.mxu1 %vm2632_vm2, %v2631_v0 }
 0x24c   :  { %v776_v26 = vsub.f32 %v774_v22, %v775_v24  ;;  %2329 = vmatprep.subr.mxu1 %v2631_v0 }
 0x24e   :  { %2267 = vmatmul.mubr.msk.f32.vlgmr.msra.gmra.mrb[8].mxu1 %vm506_vm10, %v776_v26  ;;  %v1012_v26 = vld [vmem:[#allocation3] sm:$0xf] }
 0x24f   :  { %2330 = vmatpush3.msra.mxu1 %v2789_v52  ;;  %2331 = vmatprep.mubr.msk.f32.mxu1 %vm2632_vm2, %v2631_v0  ;;  %v949_v52 = vsel %vm3021_vm6, 0, %v948_v33 }
 0x250   :  { %2462 = vmatprep.subr.bf16.mxu1 %v2633_v56  ;;  %950 = vst [vmem:[#allocation3 + $0xc] sm:$0x1] %v949_v52 }
 0x252   :  { %2332 = vmatmul.mubr.msk.f32.vlgmr.msra.gmra.mrb[10].mxu1 %vm506_vm10, %v1473_v51 }
 0x253   :  { %2464 = vmatpush3.bf16.msra.mxu1 %v2803_v57  ;;  %2366 = vmatprep.mubr.msk.f32.mxu1 %vm2632_vm2, %v2631_v0 }
 0x254   :  { %2465 = vmatprep.subr.bf16.mxu1 %v2633_v56 }
 0x257   :  { %2467 = vmatpush3.bf16.msra.mxu1 %v2818_v63  ;;  %v1019_v44 = vld [vmem:[#allocation3 + $0xc] sm:$0xf] }
 0x258   :  { %2468 = vmatprep.subr.bf16.mxu1 %v2633_v56 }
 0x25b   :  { %2470 = vmatpush3.bf16.msra.mxu1 %v2905_v9 }
 0x25c   :  { %2471 = vmatprep.subr.bf16.mxu1 %v2633_v56 }
 0x25f   :  { %2473 = vmatpush3.bf16.msra.mxu1 %v2915_v12 }
 0x260   :  { %2474 = vmatprep.subr.bf16.mxu1 %v2633_v56 }
 0x263   :  { %2476 = vmatpush3.bf16.msra.mxu1 %v2925_v15 }
 0x264   :  { %2477 = vmatprep.subr.bf16.mxu1 %v2633_v56 }
 0x267   :  { %2479 = vmatpush3.bf16.msra.mxu1 %v2935_v18 }
 0x268   :  { %2480 = vmatprep.subr.bf16.mxu1 %v2633_v56 }
 0x26b   :  { %2482 = vmatpush3.bf16.msra.mxu1 %v2945_v21 }
 0x26c   :  { %2483 = vmatprep.subr.bf16.mxu1 %v2633_v56 }
 0x26f   :  { %2485 = vmatpush3.bf16.msra.mxu1 %v2954_v25 }
 0x270   :  { %2486 = vmatprep.subr.bf16.mxu1 %v2633_v56 }
 0x31d   :  { %v846_v53 = vpop.f32.mrb[6].mxu1 }
 0x31e   :  { %v926_v54 = vrot.slane %v846_v53, %v2959_v32  ;;  %v2263_v55 = vpop.f32.mrb[7].mxu1 }
 0x320   :  { %v927_v58 = vmul.f32 %v926_v54, %v2964_v37  ;;  %v928_v60 = vmul.f32 %v926_v54, %v2968_v41  ;;  %v929_v61 = vmul.f32 %v926_v54, %v2962_v35  ;;  %v930_v62 = vmul.f32 %v926_v54, %v2966_v39 }
 0x321   :  { %v919_v59 = vpop.f32.mrb[8].mxu1 }
 0x322   :  { %v934_v1 = vrot.slane %v919_v59, %v2959_v32  ;;  %v2268_v2 = vpop.f32.mrb[9].mxu1 }
 0x324   :  { %v935_v3 = vadd.f32 %v934_v1, %v927_v58  ;;  %v936_v4 = vadd.f32 %v934_v1, %v928_v60  ;;  %v937_v5 = vadd.f32 %v934_v1, %v929_v61  ;;  %v938_v6 = vadd.f32 %v934_v1, %v930_v62 }
 0x326   :  { %v939_v7 = vmax.f32 %v935_v3, 0.0  ;;  %v940_v37 = vmax.f32 %v936_v4, 0.0  ;;  %v941_v8 = vmax.f32 %v937_v5, 0.0  ;;  %v942_v10 = vmax.f32 %v938_v6, 0.0 }
 0x328   :  { %v2016_v41 = vpack.c.bf16 %v939_v7, %v939_v7  ;;  %v2017_v11 = vpack.c.bf16 %v940_v37, %v940_v37  ;;  %v2018_v35 = vpack.c.bf16 %v941_v8, %v941_v8  ;;  %v2019_v13 = vpack.c.bf16 %v942_v10, %v942_v10 }
 0x32a   :  { %v971_v39 = vshrl.u32 %v2016_v41, 16  ;;  %v979_v14 = vshrl.u32 %v2017_v11, 16  ;;  %v988_v16 = vshrl.u32 %v2018_v35, 16  ;;  %v996_v17 = vshrl.u32 %v2019_v13, 16 }
 0x32b   :  { %v974_v20 = vshll.u32 %v2016_v41, 16  ;;  %v982_v24 = vshll.u32 %v2017_v11, 16  ;;  %v991_v30 = vshll.u32 %v2018_v35, 16  ;;  %v999_v34 = vshll.u32 %v2019_v13, 16 }
 0x32c   :  { %v973_v19 = vrot.slane %v971_v39, 7  ;;  %v981_v22 = vrot.slane %v979_v14, 7  ;;  %v990_v27 = vrot.slane %v988_v16, 7  ;;  %v998_v33 = vrot.slane %v996_v17, 7 }
 0x32e   :  { %v976_v38 = vor.u32 %v974_v20, %v973_v19  ;;  %v977_v40 = vrot.slane %v973_v19, 4  ;;  %v984_v42 = vor.u32 %v982_v24, %v981_v22  ;;  %v986_v43 = vrot.slane %v981_v22, 4 }
 0x32f   :  { %v993_v46 = vor.u32 %v991_v30, %v990_v27  ;;  %v994_v47 = vrot.slane %v990_v27, 4  ;;  %v1001_v48 = vor.u32 %v999_v34, %v998_v33  ;;  %v1003_v49 = vrot.slane %v998_v33, 4 }
 0x330   :  { %v985_v51 = vsel %vm2756_vm8, %v977_v40, %v984_v42  ;;  %v1013_v53 = vsel %vm3062_vm9, %v976_v38, %v1012_v26  ;;  %v1017_v54 = vsel %vm3021_vm6, %v986_v43, %v1016_v36 }
 0x331   :  { %v1002_v55 = vsel %vm2756_vm8, %v994_v47, %v1001_v48  ;;  %1014 = vst [vmem:[#allocation3] sm:$0xf] %v1013_v53  ;;  %1015 = vst [vmem:[#allocation3 + $0x4] sm:$0xf] %v985_v51  ;;  %v1020_v58 = vsel %vm3062_vm9, %v993_v46, %v1019_v44  ;;  %v1024_v59 = vsel %vm3021_vm6, %v1003_v49, %v1023_v45 }
 0x332   :  { %1018 = vst [vmem:[#allocation3 + $0x8] sm:$0x1] %v1017_v54  ;;  %1021 = vst [vmem:[#allocation3 + $0xc] sm:$0xf] %v1020_v58 }
 0x333   :  { %1022 = vst [vmem:[#allocation3 + $0x10] sm:$0xf] %v1002_v55  ;;  %1025 = vst [vmem:[#allocation3 + $0x14] sm:$0x1] %v1024_v59  ;;  %v2559_v55 = vld [vmem:[#allocation4 + $0x8] sm:$0xff]  }
 0x338   :  { %v1026_v60 = vld [vmem:[#allocation3] sm:$0xf]  ;;  %v3078_v61 = vld [vmem:[#allocation3 + $0x4] sm:$0xf] }
 0x339   :  { %v3080_v62 = vld [vmem:[#allocation3 + $0x8] sm:$0x1]  ;;  %v1049_v1 = vshrl.u32 %v1026_v60, 16  ;;  %v1052_v28 = vshll.u32 %v1026_v60, 16  ;;  %v1058_v2 = vshll.u32 %v3078_v61, 16  ;;  %v1062_v3 = vshrl.u32 %v3078_v61, 16 }
 0x33a   :  { %v3084_v4 = vld [vmem:[#allocation3 + $0xc] sm:$0xf]  ;;  %v1068_v5 = vshll.u32 %v3080_v62, 16  ;;  %v3087_v29 = vld [vmem:[#allocation3 + $0x10] sm:$0xf]  ;;  %v1991_v59 = vcombine.low %v1026_v60, %v3078_v61  ;;  %v1335_v60 = vrot.slane %v3078_v61, 5 }
 0x33b   :  { %v1073_v6 = vshrl.u32 %v3084_v4, 16  ;;  %v1051_v7 = vrot.slane %v1049_v1, 4  ;;  %v1054_v37 = vrot.slane %v1052_v28, 5  ;;  %v1060_v8 = vrot.slane %v1058_v2, 5  ;;  %v1047_v41 = vld [vmem:[#allocation3 + $0x14] sm:$0x1] }
 0x33c   :  { %v1064_v10 = vrot.slane %v1062_v3, 4  ;;  %v1076_v35 = vshll.u32 %v3084_v4, 16  ;;  %v1082_v13 = vshll.u32 %v3087_v29, 16  ;;  %v1086_v16 = vshrl.u32 %v3087_v29, 16  ;;  %v1328_v17 = vld [vmem:[#allocation3 + $0xc] sm:$0xe] }
 0x33d   :  { %v1075_v11 = vrot.slane %v1073_v6, 4  ;;  %v1055_v39 = vor.u32 %v1054_v37, %v1051_v7  ;;  %v1070_v19 = vrot.slane %v1068_v5, 5  ;;  %v1092_v30 = vshll.u32 %v1047_v41, 16  ;;  %v2561_v1 = vld [vmem:[#allocation4 + $0x18] sm:$0xff]   ;;  %v2562_v28 = vld [vmem:[#allocation4 + $0x20] sm:$0xff]   ;;  %v2563_v2 = vld [vmem:[#allocation4 + $0x28] sm:$0xff]  }
 0x33e   :  { %v1065_v14 = vor.u32 %v1064_v10, %v1060_v8  ;;  %v1078_v20 = vrot.slane %v1076_v35, 5  ;;  %v1084_v22 = vrot.slane %v1082_v13, 5  ;;  %v1088_v27 = vrot.slane %v1086_v16, 4  ;;  %v2564_v3 = vld [vmem:[#allocation4 + $0x30] sm:$0xff]   ;;  %v1327_v5 = vld [vmem:[#allocation3] sm:$0xe] }
 0x33f   :  { %v1056_v24 = vrot.slane %v1055_v39, 4  ;;  %v2002_v34 = vrot.slane %v1328_v17, 9  ;;  %v1342_v40 = vrot.slane %v3087_v29, 5  ;;  %v1094_v45 = vrot.slane %v1092_v30, 5  ;;  %v2567_v7 = vld [vmem:[#allocation4 + $0x80] sm:$0xff]   ;;  %v2569_v13 = vld [vmem:[#allocation4 + $0x90] sm:$0xff]  }
 0x340   :  { %v1066_v26 = vrot.slane %v1065_v14, 4  ;;  %v1079_v33 = vor.u32 %v1078_v20, %v1075_v11  ;;  %v1089_v38 = vor.u32 %v1088_v27, %v1084_v22  ;;  %v1345_v47 = vrot.slane %v1047_v41, 5  ;;  %v2568_v11 = vld [vmem:[#allocation4 + $0x88] sm:$0xff]   ;;  %v2571_v39 = vld [vmem:[#allocation4 + $0xa0] sm:$0xff]   ;;  %v1544_v14 = vpop.f32.mrb[10].mxu1 }
 0x341   :  { %v1061_v52 = vsel %vm2839_vm13, %v1056_v24, %v1060_v8  ;;  %v1344_v46 = vrot.slane %v1342_v40, 4  ;;  %v3104_v51 = vsel %vm2868_vm3, %v2002_v34, %v1342_v40  ;;  %v1337_v6 = vrot.slane %v1335_v60, 4  ;;  %v2333_v16 = vpop.f32.mrb[11].mxu1 }
 0x342   :  { %v1071_v36 = vsel %vm2839_vm13, %v1066_v26, %v1070_v19  ;;  %v1080_v43 = vrot.slane %v1079_v33, 4  ;;  %v1090_v44 = vrot.slane %v1089_v38, 4  ;;  %v2001_v37 = vrot.slane %v1327_v5, 9  ;;  %v1742_v5 = vld [vmem:[%s3203_s8] sm:$0x1] }
 0x343   :  { %v1981_v42 = vcombine.low %v1061_v52, %v1071_v36  ;;  %v3108_v53 = vsel %vm2868_vm3, %v1344_v46, %v1345_v47  ;;  %v1338_v8 = vrot.slane %v3080_v62, 5  ;;  %v1992_v41 = vcombine.low %v3084_v4, %v3087_v29  ;;  %v2570_v62 = vld [vmem:[#allocation4 + $0x98] sm:$0xff]   ;;  %v2572_v4 = vld [vmem:[#allocation4 + $0xa8] sm:$0xff]  }
 0x344   :  { %v1085_v48 = vsel %vm2839_vm13, %v1080_v43, %v1084_v22  ;;  %v1095_v49 = vsel %vm2839_vm13, %v1090_v44, %v1094_v45  ;;  %v2004_v58 = vcombine.low %v3104_v51, %v3108_v53  ;;  %v1336_v61 = vsel %vm2868_vm3, %v2001_v37, %v1335_v60  ;;  %v2574_v29 = vld [vmem:[#allocation4 + $0xb8] sm:$0xff]  }
 0x345   :  { %2285 = vmatprep.mubr.bf16.mxu0 %v1981_v42  ;;  %v1982_v54 = vcombine.low %v1085_v48, %v1095_v49  ;;  %v1339_v10 = vsel %vm2868_vm3, %v1337_v6, %v1338_v8  ;;  %v1551_v17 = vrot.slane %v1544_v14, %v2959_v32 }
 0x346   :  { %v2003_v35 = vcombine.low %v1336_v61, %v1339_v10 }
 0x347   :  { %2286 = vmatmul.mubr.bf16.vlgmr.msra.gmra.mrb[4].mxu0 %v1982_v54 }
 0x348   :  { %2290 = vmatpush3.bf16.msra.mxu0 %v3030_v31  ;;  %2305 = vmatprep.mubr.bf16.mxu0 %v1991_v59  ;;  %v2565_v31 = vld [vmem:[#allocation4 + $0x38] sm:$0xff]  }
 0x349   :  { %2291 = vmatprep.subr.bf16.mxu0 %v2559_v55 }
 0x34c   :  { %2292 = vmatpush3.bf16.msra.mxu0 %v2559_v55 }
 0x34d   :  { %2293 = vmatprep.subr.bf16.mxu0 %v2560_v23 }
 0x350   :  { %2294 = vmatpush3.bf16.msra.mxu0 %v2560_v23 }
 0x351   :  { %2295 = vmatprep.subr.bf16.mxu0 %v2561_v1 }
 0x354   :  { %2296 = vmatpush3.bf16.msra.mxu0 %v2561_v1 }
 0x355   :  { %2297 = vmatprep.subr.bf16.mxu0 %v2562_v28 }
 0x358   :  { %2298 = vmatpush3.bf16.msra.mxu0 %v2562_v28 }
 0x359   :  { %2299 = vmatprep.subr.bf16.mxu0 %v2563_v2 }
 0x35c   :  { %2300 = vmatpush3.bf16.msra.mxu0 %v2563_v2 }
 0x35d   :  { %2301 = vmatprep.subr.bf16.mxu0 %v2564_v3 }
 0x360   :  { %2302 = vmatpush3.bf16.msra.mxu0 %v2564_v3  ;;  %v1738_v3 = vld [vmem:[%s3202_s7] sm:$0x1]  ;;  %s2634_s7 = smov [#allocation7]  }
 0x361   :  { %2303 = vmatprep.subr.bf16.mxu0 %v2565_v31  ;;  %s1920_s8 = sshll.u32 %s2634_s7, 4  ;;  %s1921_s8 = int_to_ptr.vmem [resolvable:$true] %s1920_s8 }
 0x362   :  { %s2602_s18 = scalar_lea.vmem %s1921_s8, 512  ;;  %p2607_p9 = scmp.lt.s32.totalorder %s1921_s8, %s1921_s8 }
 0x363   :  { %p2603_p8 = scmp.ne.s32.totalorder %s1921_s8, %s2602_s18  ;;  %p2608_p10 = scmp.lt.s32.totalorder %s2602_s18, %s2602_s18 }
 0x364   :  { %2304 = vmatpush3.bf16.msra.mxu0 %v2565_v31 }
 0x365   :  { %2309 = vmatprep.subr.bf16.mxu0 %v2567_v7  ;;  %p2609_p11 = por %p2608_p10, %p2607_p9 }
 0x367   :  { %2306 = vmatmul.mubr.bf16.vlgmr.msra.gmra.mrb[4].mxu0 %v1992_v41  ;;  %p2610_p12 = pnand %p2609_p11, %p2603_p8 }
 0x368   :  { %2310 = vmatpush3.bf16.msra.mxu0 %v2567_v7  ;;  %2325 = vmatprep.mubr.bf16.mxu0 %v2003_v35 }
 0x369   :  { %2311 = vmatprep.subr.bf16.mxu0 %v2568_v11 }
 0x36c   :  { %2312 = vmatpush3.bf16.msra.mxu0 %v2568_v11 }
 0x36d   :  { %2313 = vmatprep.subr.bf16.mxu0 %v2569_v13 }
 0x370   :  { %2314 = vmatpush3.bf16.msra.mxu0 %v2569_v13 }
 0x371   :  { %2315 = vmatprep.subr.bf16.mxu0 %v2570_v62 }
 0x374   :  { %2316 = vmatpush3.bf16.msra.mxu0 %v2570_v62 }
 0x375   :  { %2317 = vmatprep.subr.bf16.mxu0 %v2571_v39 }
 0x378   :  { %2318 = vmatpush3.bf16.msra.mxu0 %v2571_v39 }
 0x379   :  { %2319 = vmatprep.subr.bf16.mxu0 %v2572_v4 }
 0x37c   :  { %2320 = vmatpush3.bf16.msra.mxu0 %v2572_v4 }
 0x37d   :  { %2321 = vmatprep.subr.bf16.mxu0 %v2573_v50 }
 0x380   :  { %2322 = vmatpush3.bf16.msra.mxu0 %v2573_v50 }
 0x381   :  { %2323 = vmatprep.subr.bf16.mxu0 %v2574_v29 }
 0x384   :  { %2324 = vmatpush3.bf16.msra.mxu0 %v2574_v29 }
 0x387   :  { %2326 = vmatmul.mubr.bf16.vlgmr.msra.gmra.mrb[4].mxu0 %v2004_v58 }
 0x45a   :  { %v2327_v19 = vpop.f32.mrb[4].mxu0 }
 0x45b   :  { %v3123_v20 = vadd.f32 %v2327_v19, %v1551_v17  ;;  %v1454_v22 = vpop.f32.mrb[5].mxu0 }
 0x45c   :  { %v3125_v24 = vadd.f32 %v1551_v17, %v1454_v22  ;;  %v2328_v26 = vpop.f32.mrb[6].mxu0 }
 0x45d   :  { %v3127_v27 = vadd.f32 %v2328_v26, %v1551_v17  ;;  %v1457_v30 = vpop.f32.mrb[7].mxu0  ;;  %v1653_v49 = vmul.f32 %v3123_v20, %v3123_v20 }
 0x45e   :  { %v3129_v33 = vadd.f32 %v1551_v17, %v1457_v30  ;;  %v1651_v45 = vmul.f32 %v3125_v24, %v3125_v24 }
 0x45f   :  { %v1654_v53 = vmul.f32 %v3127_v27, %v3127_v27 }
 0x460   :  { %v1556_v34 = vadd.f32 %v3129_v33, %v3125_v24  ;;  %v1652_v43 = vmul.f32 %v3129_v33, %v3129_v33 }
 0x462   :  { %v1557_v52 = vadd.f32 %v1556_v34, %v3123_v20  ;;  %v1655_v47 = vadd.f32 %v1652_v43, %v1651_v45 }
 0x464   :  { %v1558_v36 = vadd.f32 %v1557_v52, %v3127_v27  ;;  %v1656_v51 = vadd.f32 %v1655_v47, %v1653_v49 }
 0x466   :  { %v1559_v38 = vrot.slane %v1558_v36, 4  ;;  %v1657_v54 = vadd.f32 %v1656_v51, %v1654_v53 }
 0x468   :  { %v1560_v40 = vadd.f32 %v1559_v38, %v1558_v36  ;;  %v1658_v55 = vrot.slane %v1657_v54, 4 }
 0x46a   :  { %v1561_v42 = vrot.slane %v1560_v40, 2 }
 0x46c   :  { %v1562_v44 = vadd.f32 %v1561_v42, %v1560_v40 }
 0x46e   :  { %v1563_v46 = vrot.slane %v1562_v44, 1 }
 0x470   :  { %v1564_v48 = vadd.f32 %v1563_v46, %v1562_v44 }
 0x472   :  { %2367 = vmatmul.mubr.f32.vlgmr.msra.gmra.mrb[12].mxu1 %v1564_v48 }
 0x473   :  { %2488 = vmatpush3.bf16.msra.mxu1 %v2803_v57  ;;  %2401 = vmatprep.mubr.msk.f32.mxu1 %vm2632_vm2, %v2631_v0  ;;  %v1659_v57 = vadd.f32 %v1658_v55, %v1657_v54 }
 0x474   :  { %2489 = vmatprep.subr.bf16.mxu1 %v2633_v56 }
 0x475   :  { %v1660_v58 = vrot.slane %v1659_v57, 2 }
 0x477   :  { %2491 = vmatpush3.bf16.msra.mxu1 %v2818_v63  ;;  %v1661_v63 = vadd.f32 %v1660_v58, %v1659_v57 }
 0x478   :  { %2492 = vmatprep.subr.bf16.mxu1 %v2633_v56 }
 0x47b   :  { %2494 = vmatpush3.bf16.msra.mxu1 %v2905_v9  ;;  %v1662_v9 = vrot.slane %v1661_v63, 1 }
 0x47c   :  { %2495 = vmatprep.subr.bf16.mxu1 %v2633_v56 }
 0x47f   :  { %2497 = vmatpush3.bf16.msra.mxu1 %v2915_v12  ;;  %v1663_v12 = vadd.f32 %v1662_v9, %v1661_v63 }
 0x480   :  { %2498 = vmatprep.subr.bf16.mxu1 %v2633_v56 }
 0x483   :  { %2500 = vmatpush3.bf16.msra.mxu1 %v2925_v15  ;;  %v2579_v15 = vld [vmem:[%s3205_s10] sm:$0xff] }
 0x484   :  { %2501 = vmatprep.subr.bf16.mxu1 %v2633_v56 }
 0x487   :  { %2503 = vmatpush3.bf16.msra.mxu1 %v2935_v18 }
 0x488   :  { %2504 = vmatprep.subr.bf16.mxu1 %v2633_v56 }
 0x48b   :  { %2506 = vmatpush3.bf16.msra.mxu1 %v2945_v21 }
 0x48c   :  { %2507 = vmatprep.subr.bf16.mxu1 %v2633_v56 }
 0x48f   :  { %2509 = vmatpush3.bf16.msra.mxu1 %v2954_v25 }
 0x490   :  { %2404 = vmatprep.subr.mxu1 %v2631_v0 }
 0x492   :  { %2402 = vmatmul.mubr.f32.vlgmr.msra.gmra.mrb[14].mxu1 %v1663_v12 }
 0x493   :  { %2405 = vmatpush3.msra.mxu1 %v2579_v15  ;;  %2406 = vmatprep.mubr.msk.f32.mxu1 %vm2632_vm2, %v2631_v0 }
 0x494   :  { %2409 = vmatprep.subr.mxu1 %v2631_v0 }
 0x545   :  { %v1647_v18 = vpop.f32.mrb[12].mxu1 }
 0x546   :  { %v2368_v21 = vpop.f32.mrb[13].mxu1  ;;  %v1734_v56 = vmul.f32 0.001953125, %v1647_v18 }
 0x548   :  { %v1736_v23 = vmul.f32 %v1734_v56, %v1734_v56 }
 0x565   :  { %v1730_v59 = vpop.f32.mrb[14].mxu1 }
 0x566   :  { %v1735_v25 = vmul.f32 0.001953125, %v1730_v59  ;;  %v2403_v1 = vpop.f32.mrb[15].mxu1 }
 0x568   :  { %v1737_v28 = vsub.f32 %v1735_v25, %v1736_v23 }
 0x56a   :  { %v1739_v2 = vadd.f32 1e-05, %v1737_v28 }
 0x56c   :  { %2577 = vrsqrt.f32 %v1739_v2 }
 0x576   :  { %v2578_v60 = vpop.eup %2577 }
 0x577   :  { %v1741_v31 = vmul.f32 %v2578_v60, %v1738_v3 }
 0x579   :  { %2407 = vmatmul.mubr.msk.f32.vlgmr.msra.gmra.mrb[16].mxu1 %vm506_vm10, %v1741_v31  ;;  %v1743_v6 = vmul.f32 %v1741_v31, %v1734_v56 }
 0x57a   :  { %2410 = vmatpush3.msra.mxu1 %v2579_v15  ;;  %2411 = vmatprep.mubr.msk.f32.mxu1 %vm2632_vm2, %v2631_v0 }
 0x57b   :  { %v1744_v7 = vsub.f32 %v1742_v5, %v1743_v6 }
 0x57d   :  { %2412 = vmatmul.mubr.msk.f32.vlgmr.msra.gmra.mrb[18].mxu1 %vm506_vm10, %v1744_v7 }
 0x64c   :  { %v1814_v37 = vpop.f32.mrb[16].mxu1 }
 0x64d   :  { %v1894_v8 = vrot.slane %v1814_v37, %v2959_v32  ;;  %v2408_v10 = vpop.f32.mrb[17].mxu1 }
 0x64f   :  { %v1895_v41 = vmul.f32 %v1894_v8, %v3125_v24  ;;  %v1896_v11 = vmul.f32 %v1894_v8, %v3129_v33  ;;  %v1897_v35 = vmul.f32 %v1894_v8, %v3123_v20  ;;  %v1898_v13 = vmul.f32 %v1894_v8, %v3127_v27 }
 0x650   :  { %v1887_v61 = vpop.f32.mrb[18].mxu1 }
 0x651   :  { %v1902_v62 = vrot.slane %v1887_v61, %v2959_v32  ;;  %v2413_v39 = vpop.f32.mrb[19].mxu1 }
 0x653   :  { %v1903_v0 = vadd.f32 %v1902_v62, %v1895_v41  ;;  %v1904_v4 = vadd.f32 %v1902_v62, %v1896_v11  ;;  %v1905_v50 = vadd.f32 %v1902_v62, %v1897_v35  ;;  %v1906_v29 = vadd.f32 %v1902_v62, %v1898_v13 }
 0x655   :  { %v1907_v14 = vmax.f32 %v1903_v0, 0.0  ;;  %v1908_v16 = vmax.f32 %v1904_v4, 0.0  ;;  %v1909_v17 = vmax.f32 %v1905_v50, 0.0  ;;  %v1910_v19 = vmax.f32 %v1906_v29, 0.0 }
 0x657   :  { %1911 = vst [vmem:[#allocation7] sm:$0xff] %v1907_v14  ;;  %1912 = vst [vmem:[#allocation7 + $0x8] sm:$0xff] %v1908_v16 }
 0x658   :  { %1913 = vst [vmem:[#allocation7 + $0x10] sm:$0xff] %v1909_v17  ;;  %1914 = vst [vmem:[#allocation7 + $0x18] sm:$0xff] %v1910_v19 }
 0x659   :  { %2613 = shalt.err (!%p2610_p12)
}
 0x65a   :  { %s2614_s21 = scalar_lea.hbm %s3206_s11, 512 }
 0x65b   :  { %p2615_p13 = scmp.ne.s32.totalorder %s3206_s11, %s2614_s21  ;;  %p2618_p0 = scmp.lt.u32.totalorder %s2614_s21, %s3206_s11 }
 0x65d   :  { %p2620_p1 = pnand %p2618_p0, %p2615_p13 }
 0x65f   :  { %2623 = shalt.err (!%p2620_p1)
}
 0x660   :  { %s2635_s26 = smov 128   ;;  %s2636_s0 = smov 8  }
 0x661   :  { %1926 = dma.vmem_to_hbm [thread:$0]  %s1921_s8, 512, %s3206_s11, [#allocation6], %s2635_s26, %s2635_s26, %s2636_s0  }
 0x662   :  { %2626 = dma.done.wait [#allocation6], 512  }
 0x663   :  { %2627 = vsyncadd [#allocation6], 4294966784 }
 0x664   :  { %1930 = vsyncpa [#allocation5], 1 }
 0x665   :  { %1931 = vsyncpa [#allocation6], 1 }

</bundles_post_ra>
